<compile_context>
chip_gen: v7x
topology: tpu7x:2x2x1
jax: 0.10.0
libtpu: 0.0.40
codegen_flags: <defaults>
</compile_context>

<pallas_src>
import jax
import jax.numpy as jnp
from jax import lax
from jax.experimental import pallas as pl
from jax.experimental.pallas import tpu as pltpu

SLOT = 128  # lane-aligned slot width per conv2 tap (>= N*OH*OW output pixels)


def _full_spec(shape):
    # Whole array as one block (tiny problem; everything fits in VMEM).
    # NOTE(scale-up): for larger N*H*W, add an M-tiled "parallel" grid axis and
    # an explicit vmem_limit_bytes (v7x has only 64 MiB VMEM).
    return pl.BlockSpec(shape, lambda i: (0,) * len(shape))


# ----------------------------- fused Pallas kernel ---------------------------

def _fused_resnet_block_kernel(p1_ref, p11_ref, w1_ref, w11_ref, w2_ref,
                               affine_ref, mask_ref, o_ref):
    d = w1_ref.shape[0]

    # ---- stage 1: h = relu(bn1(conv1(x)))   (dropout == identity, eval mode)
    # lane-dense GEMM: (D, K1) @ (K1, 9*SLOT) -> (D, 9*SLOT); h stays on-chip.
    h = jnp.dot(w1_ref[...], p1_ref[...], preferred_element_type=jnp.float32)
    sc1 = affine_ref[:, 0:1]          # (D, 1), broadcast over lanes
    sh1 = affine_ref[:, 1:2]          # conv1 bias already folded in
    h = jnp.maximum(h * sc1 + sh1, 0.0) * mask_ref[...]   # zero the pad ring
    h = h.astype(jnp.bfloat16)        # bf16 MXU inputs for stage 2

    # ---- stage 2: out = relu(pre_bn(conv2(h) + conv11(x)))
    # skip path: (D, K1) @ (K1, SLOT) -> (D, SLOT), accumulated in f32.
    acc = jnp.dot(w11_ref[...], p11_ref[...],
                  preferred_element_type=jnp.float32)
    # conv2: stride == kernel == 3 on the zero-padded h grid -> receptive
    # fields do not overlap, so conv2 is 9 independent tap dots, each reading
    # one 128-lane-aligned slot of h.
    for t in range(9):
        w2_t = w2_ref[t * d:(t + 1) * d, :]        # (D_out, D_in), static slice
        h_t = h[:, t * SLOT:(t + 1) * SLOT]        # (D_in, SLOT), 128-aligned
        acc = acc + jnp.dot(w2_t, h_t, preferred_element_type=jnp.float32)

    sc2 = affine_ref[:, 2:3]
    sh2 = affine_ref[:, 3:4]          # conv2 + conv11 biases folded in
    o_ref[...] = jnp.maximum(acc * sc2 + sh2, 0.0)


# ----------------------------- forward pass ----------------------------------

def resnet_block_forward(x_nchw, params):
    """x: (N, Cin, H, W) float32 NCHW (PyTorch layout). Inference-mode BN."""
    eps = 1e-5
    x = x_nchw.astype(jnp.float32)
    N, Cin, H, W = x.shape
    D = params['w1'].shape[0]
    K1 = Cin * 9
    K1P = ((K1 + 7) // 8) * 8                      # pad contraction to 8-mult
    OH = (H + 2 - 3) // 3 + 1
    OW = (W + 2 - 3) // 3 + 1
    M2 = N * OH * OW
    assert M2 <= SLOT, "toy-size kernel: one 128-lane slot per conv2 tap"

    # conv1 im2col at every spatial position, K order (c, dkh, dkw),
    # built straight from NCHW (no NHWC transpose).
    xp = jnp.pad(x, ((0, 0), (0, 0), (1, 1), (1, 1)))          # (N,C,H+2,W+2)
    cols = [xp[:, :, dkh:dkh + H, dkw:dkw + W]
            for dkh in range(3) for dkw in range(3)]
    pat1 = jnp.stack(cols, axis=2).reshape(N, K1, H, W)

    # conv2 sees h zero-padded by 1; with k=3, s=3 its receptive fields tile
    # the padded grid exactly -> each tap (kh, kw) is one stride-3 slice.
    pat1p = jnp.pad(pat1, ((0, 0), (0, 0), (1, 1), (1, 1)))    # (N,K1,H+2,W+2)
    oidx = jnp.arange(OH)
    slots, mask_slots = [], []
    for kh in range(3):
        for kw in range(3):
            t = pat1p[:, :, kh:kh + 3 * OH:3, kw:kw + 3 * OW:3]  # (N,K1,OH,OW)
            t = jnp.transpose(t, (1, 0, 2, 3)).reshape(K1, M2)   # lane-dense
            slots.append(jnp.pad(t, ((0, K1P - K1), (0, SLOT - M2))))
            vh = ((3 * oidx + kh - 1) >= 0) & ((3 * oidx + kh - 1) < H)
            vw = ((3 * oidx + kw - 1) >= 0) & ((3 * oidx + kw - 1) < W)
            v = (vh[:, None] & vw[None, :]).astype(jnp.float32)  # (OH, OW)
            v = jnp.tile(v.reshape(1, OH * OW), (N, 1)).reshape(M2)
            mask_slots.append(jnp.pad(v, (0, SLOT - M2)))
    p1T = jnp.concatenate(slots, axis=1).astype(jnp.bfloat16)    # (K1P, 9*SLOT)
    mask = jnp.concatenate(mask_slots).reshape(1, 9 * SLOT)      # f32 {0,1}

    # conv11 (skip) im2col, K order (c, kh, kw), lane-dense.
    cols11 = [xp[:, :, kh:kh + 3 * OH:3, kw:kw + 3 * OW:3]
              for kh in range(3) for kw in range(3)]
    p11 = jnp.stack(cols11, axis=2).reshape(N, K1, OH, OW)
    p11T = jnp.transpose(p11, (1, 0, 2, 3)).reshape(K1, M2)
    p11T = jnp.pad(p11T, ((0, K1P - K1), (0, SLOT - M2))).astype(jnp.bfloat16)

    # weights in GEMM orientation (D on sublanes), bf16 for the MXU.
    w1T = jnp.pad(params['w1'].reshape(D, K1),
                  ((0, 0), (0, K1P - K1))).astype(jnp.bfloat16)   # (D, K1P)
    w11T = jnp.pad(params['w11'].reshape(D, K1),
                   ((0, 0), (0, K1P - K1))).astype(jnp.bfloat16)  # (D, K1P)
    w2s = jnp.transpose(params['w2'], (2, 3, 0, 1)).reshape(9 * D, D) \
             .astype(jnp.bfloat16)                                # (9D, D)

    # BN folded to per-channel scale/shift; conv biases folded into the shift.
    sc1 = params['bn1_gamma'] / jnp.sqrt(params['bn1_var'] + eps)
    sh1 = params['bn1_beta'] - params['bn1_mean'] * sc1 + params['b1'] * sc1
    sc2 = params['pbn_gamma'] / jnp.sqrt(params['pbn_var'] + eps)
    sh2 = (params['pbn_beta'] - params['pbn_mean'] * sc2
           + (params['b2'] + params['b11']) * sc2)
    affine = jnp.stack([sc1, sh1, sc2, sh2], axis=1).astype(jnp.float32)  # (D,4)

    out_t = pl.pallas_call(
        _fused_resnet_block_kernel,
        out_shape=jax.ShapeDtypeStruct((D, SLOT), jnp.float32),
        grid=(1,),
        in_specs=[_full_spec(p1T.shape), _full_spec(p11T.shape),
                  _full_spec(w1T.shape), _full_spec(w11T.shape),
                  _full_spec(w2s.shape), _full_spec(affine.shape),
                  _full_spec(mask.shape)],
        out_specs=_full_spec((D, SLOT)),
        compiler_params=pltpu.CompilerParams(
            dimension_semantics=("arbitrary",)),
    )(p1T, p11T, w1T, w11T, w2s, affine, mask)

    # lane-dense (D, pixels) -> NCHW
    out = out_t[:, :M2].reshape(D, N, OH, OW)
    return jnp.transpose(out, (1, 0, 2, 3))


# ----------------------------- pure-JAX reference ----------------------------

def reference_forward(x, params):
    eps = 1e-5

    def conv(xx, w, b, stride):
        y = lax.conv_general_dilated(
            xx, w, (stride, stride), ((1, 1), (1, 1)),
            dimension_numbers=('NCHW', 'OIHW', 'NCHW'),
            precision=lax.Precision.HIGHEST)
        return y + b.reshape(1, -1, 1, 1)

    def bn(xx, g, bta, m, v):
        return (g.reshape(1, -1, 1, 1) * (xx - m.reshape(1, -1, 1, 1))
                / jnp.sqrt(v.reshape(1, -1, 1, 1) + eps)
                + bta.reshape(1, -1, 1, 1))

    prev_mp = conv(x, params['w11'], params['b11'], 3)
    out = conv(x, params['w1'], params['b1'], 1)
    out = bn(out, params['bn1_gamma'], params['bn1_beta'],
             params['bn1_mean'], params['bn1_var'])
    out = jnp.maximum(out, 0.0)
    out = conv(out, params['w2'], params['b2'], 3)
    out = out + prev_mp
    out = bn(out, params['pbn_gamma'], params['pbn_beta'],
             params['pbn_mean'], params['pbn_var'])
    return jnp.maximum(out, 0.0)


# ----------------------------------- main -------------------------------------

if __name__ == "__main__":
    in_depth, depth = 4, 8
    N, H, W = 2, 16, 16

    keys = jax.random.split(jax.random.PRNGKey(0), 11)
    params = dict(
        w1=0.1 * jax.random.normal(keys[0], (depth, in_depth, 3, 3), jnp.float32),
        b1=0.05 * jax.random.normal(keys[1], (depth,), jnp.float32),
        w2=0.1 * jax.random.normal(keys[2], (depth, depth, 3, 3), jnp.float32),
        b2=0.05 * jax.random.normal(keys[3], (depth,), jnp.float32),
        w11=0.1 * jax.random.normal(keys[4], (depth, in_depth, 3, 3), jnp.float32),
        b11=0.05 * jax.random.normal(keys[5], (depth,), jnp.float32),
        bn1_gamma=1.0 + 0.1 * jax.random.normal(keys[6], (depth,), jnp.float32),
        bn1_beta=0.1 * jax.random.normal(keys[7], (depth,), jnp.float32),
        bn1_mean=jnp.zeros((depth,), jnp.float32),
        bn1_var=jnp.ones((depth,), jnp.float32),
        pbn_gamma=1.0 + 0.1 * jax.random.normal(keys[8], (depth,), jnp.float32),
        pbn_beta=0.1 * jax.random.normal(keys[9], (depth,), jnp.float32),
        pbn_mean=jnp.zeros((depth,), jnp.float32),
        pbn_var=jnp.ones((depth,), jnp.float32),
    )
    x = jax.random.normal(keys[10], (N, in_depth, H, W), jnp.float32)

    out = jax.jit(resnet_block_forward)(x, params)
    out = jax.block_until_ready(out)

    ref = reference_forward(x, params)
    assert out.shape == (N, depth, 6, 6), out.shape
    # Tolerance documents the precision choice: MXU operands are bf16 (f32
    # accumulation) per the perf review; the reference uses f32 HIGHEST convs.
    if not bool(jnp.allclose(out, ref, atol=3e-2, rtol=2e-2)):
        raise AssertionError("Pallas output does not match reference")

    print("KERNEL_OK")
</pallas_src>

<mosaic_0001>
module attributes {stable_mosaic.version = 11 : i64} {
  func.func @_fused_resnet_block_kernel(%arg0: i32, %arg1: memref<40x1152xbf16, #tpu.memory_space<vmem>>, %arg2: memref<40x128xbf16, #tpu.memory_space<vmem>>, %arg3: memref<8x40xbf16, #tpu.memory_space<vmem>>, %arg4: memref<8x40xbf16, #tpu.memory_space<vmem>>, %arg5: memref<72x8xbf16, #tpu.memory_space<vmem>>, %arg6: memref<8x4xf32, #tpu.memory_space<vmem>>, %arg7: memref<1x1152xf32, #tpu.memory_space<vmem>>, %arg8: memref<8x128xf32, #tpu.memory_space<vmem>>) attributes {dimension_semantics = [#tpu.dimension_semantics<arbitrary>], iteration_bounds = array<i64: 1>, scalar_prefetch = 0 : i64, scratch_operands = 0 : i64, tpu.core_type = #tpu.core_type<tc>, window_params = [{pipeline_mode = #tpu.pipeline_mode<synchronous>, transform_indices = @transform_0, window_bounds = array<i64: 40, 1152>}, {pipeline_mode = #tpu.pipeline_mode<synchronous>, transform_indices = @transform_1, window_bounds = array<i64: 40, 128>}, {pipeline_mode = #tpu.pipeline_mode<synchronous>, transform_indices = @transform_2, window_bounds = array<i64: 8, 40>}, {pipeline_mode = #tpu.pipeline_mode<synchronous>, transform_indices = @transform_3, window_bounds = array<i64: 8, 40>}, {pipeline_mode = #tpu.pipeline_mode<synchronous>, transform_indices = @transform_4, window_bounds = array<i64: 72, 8>}, {pipeline_mode = #tpu.pipeline_mode<synchronous>, transform_indices = @transform_5, window_bounds = array<i64: 8, 4>}, {pipeline_mode = #tpu.pipeline_mode<synchronous>, transform_indices = @transform_6, window_bounds = array<i64: 1, 1152>}, {pipeline_mode = #tpu.pipeline_mode<synchronous>, transform_indices = @transform_7, window_bounds = array<i64: 8, 128>}]} {
    %c0 = arith.constant 0 : index
    %c0_0 = arith.constant 0 : index
    %0 = vector.load %arg3[%c0, %c0_0] : memref<8x40xbf16, #tpu.memory_space<vmem>>, vector<8x40xbf16>
    %c0_1 = arith.constant 0 : index
    %c0_2 = arith.constant 0 : index
    %1 = vector.load %arg1[%c0_1, %c0_2] : memref<40x1152xbf16, #tpu.memory_space<vmem>>, vector<40x1152xbf16>
    %cst = arith.constant dense<0.000000e+00> : vector<8x1152xf32>
    %2 = tpu.matmul %0, %1, %cst {dimension_numbers = #tpu.dot_dimension_numbers<[1], [0], [0], [1], [0, 0, 1, 1], [], []>} : vector<8x40xbf16>, vector<40x1152xbf16>, vector<8x1152xf32> -> vector<8x1152xf32>
    %c0_3 = arith.constant 0 : index
    %c0_4 = arith.constant 0 : index
    %3 = vector.load %arg6[%c0_3, %c0_4] : memref<8x4xf32, #tpu.memory_space<vmem>>, vector<8x1xf32>
    %c0_5 = arith.constant 0 : index
    %c1 = arith.constant 1 : index
    %4 = vector.load %arg6[%c0_5, %c1] : memref<8x4xf32, #tpu.memory_space<vmem>>, vector<8x1xf32>
    %5 = vector.broadcast %3 : vector<8x1xf32> to vector<8x1152xf32>
    %6 = arith.mulf %2, %5 : vector<8x1152xf32>
    %7 = vector.broadcast %4 : vector<8x1xf32> to vector<8x1152xf32>
    %8 = arith.addf %6, %7 : vector<8x1152xf32>
    %cst_6 = arith.constant 0.000000e+00 : f32
    %9 = vector.broadcast %cst_6 : f32 to vector<8x1152xf32>
    %10 = arith.maximumf %8, %9 : vector<8x1152xf32>
    %c0_7 = arith.constant 0 : index
    %c0_8 = arith.constant 0 : index
    %11 = vector.load %arg7[%c0_7, %c0_8] : memref<1x1152xf32, #tpu.memory_space<vmem>>, vector<1x1152xf32>
    %12 = vector.broadcast %11 : vector<1x1152xf32> to vector<8x1152xf32>
    %13 = arith.mulf %10, %12 : vector<8x1152xf32>
    %14 = arith.truncf %13 : vector<8x1152xf32> to vector<8x1152xbf16>
    %c0_9 = arith.constant 0 : index
    %c0_10 = arith.constant 0 : index
    %15 = vector.load %arg4[%c0_9, %c0_10] : memref<8x40xbf16, #tpu.memory_space<vmem>>, vector<8x40xbf16>
    %c0_11 = arith.constant 0 : index
    %c0_12 = arith.constant 0 : index
    %16 = vector.load %arg2[%c0_11, %c0_12] : memref<40x128xbf16, #tpu.memory_space<vmem>>, vector<40x128xbf16>
    %cst_13 = arith.constant dense<0.000000e+00> : vector<8x128xf32>
    %17 = tpu.matmul %15, %16, %cst_13 {dimension_numbers = #tpu.dot_dimension_numbers<[1], [0], [0], [1], [0, 0, 1, 1], [], []>} : vector<8x40xbf16>, vector<40x128xbf16>, vector<8x128xf32> -> vector<8x128xf32>
    %c0_14 = arith.constant 0 : index
    %c0_15 = arith.constant 0 : index
    %18 = vector.load %arg5[%c0_14, %c0_15] : memref<72x8xbf16, #tpu.memory_space<vmem>>, vector<8x8xbf16>
    %19 = vector.extract_strided_slice %14 {offsets = [0, 0], sizes = [8, 128], strides = [1, 1]} : vector<8x1152xbf16> to vector<8x128xbf16>
    %cst_16 = arith.constant dense<0.000000e+00> : vector<8x128xf32>
    %20 = tpu.matmul %18, %19, %cst_16 {dimension_numbers = #tpu.dot_dimension_numbers<[1], [0], [0], [1], [0, 0, 1, 1], [], []>} : vector<8x8xbf16>, vector<8x128xbf16>, vector<8x128xf32> -> vector<8x128xf32>
    %21 = arith.addf %17, %20 : vector<8x128xf32>
    %c8 = arith.constant 8 : index
    %c0_17 = arith.constant 0 : index
    %22 = vector.load %arg5[%c8, %c0_17] : memref<72x8xbf16, #tpu.memory_space<vmem>>, vector<8x8xbf16>
    %23 = vector.extract_strided_slice %14 {offsets = [0, 128], sizes = [8, 128], strides = [1, 1]} : vector<8x1152xbf16> to vector<8x128xbf16>
    %cst_18 = arith.constant dense<0.000000e+00> : vector<8x128xf32>
    %24 = tpu.matmul %22, %23, %cst_18 {dimension_numbers = #tpu.dot_dimension_numbers<[1], [0], [0], [1], [0, 0, 1, 1], [], []>} : vector<8x8xbf16>, vector<8x128xbf16>, vector<8x128xf32> -> vector<8x128xf32>
    %25 = arith.addf %21, %24 : vector<8x128xf32>
    %c16 = arith.constant 16 : index
    %c0_19 = arith.constant 0 : index
    %26 = vector.load %arg5[%c16, %c0_19] : memref<72x8xbf16, #tpu.memory_space<vmem>>, vector<8x8xbf16>
    %27 = vector.extract_strided_slice %14 {offsets = [0, 256], sizes = [8, 128], strides = [1, 1]} : vector<8x1152xbf16> to vector<8x128xbf16>
    %cst_20 = arith.constant dense<0.000000e+00> : vector<8x128xf32>
    %28 = tpu.matmul %26, %27, %cst_20 {dimension_numbers = #tpu.dot_dimension_numbers<[1], [0], [0], [1], [0, 0, 1, 1], [], []>} : vector<8x8xbf16>, vector<8x128xbf16>, vector<8x128xf32> -> vector<8x128xf32>
    %29 = arith.addf %25, %28 : vector<8x128xf32>
    %c24 = arith.constant 24 : index
    %c0_21 = arith.constant 0 : index
    %30 = vector.load %arg5[%c24, %c0_21] : memref<72x8xbf16, #tpu.memory_space<vmem>>, vector<8x8xbf16>
    %31 = vector.extract_strided_slice %14 {offsets = [0, 384], sizes = [8, 128], strides = [1, 1]} : vector<8x1152xbf16> to vector<8x128xbf16>
    %cst_22 = arith.constant dense<0.000000e+00> : vector<8x128xf32>
    %32 = tpu.matmul %30, %31, %cst_22 {dimension_numbers = #tpu.dot_dimension_numbers<[1], [0], [0], [1], [0, 0, 1, 1], [], []>} : vector<8x8xbf16>, vector<8x128xbf16>, vector<8x128xf32> -> vector<8x128xf32>
    %33 = arith.addf %29, %32 : vector<8x128xf32>
    %c32 = arith.constant 32 : index
    %c0_23 = arith.constant 0 : index
    %34 = vector.load %arg5[%c32, %c0_23] : memref<72x8xbf16, #tpu.memory_space<vmem>>, vector<8x8xbf16>
    %35 = vector.extract_strided_slice %14 {offsets = [0, 512], sizes = [8, 128], strides = [1, 1]} : vector<8x1152xbf16> to vector<8x128xbf16>
    %cst_24 = arith.constant dense<0.000000e+00> : vector<8x128xf32>
    %36 = tpu.matmul %34, %35, %cst_24 {dimension_numbers = #tpu.dot_dimension_numbers<[1], [0], [0], [1], [0, 0, 1, 1], [], []>} : vector<8x8xbf16>, vector<8x128xbf16>, vector<8x128xf32> -> vector<8x128xf32>
    %37 = arith.addf %33, %36 : vector<8x128xf32>
    %c40 = arith.constant 40 : index
    %c0_25 = arith.constant 0 : index
    %38 = vector.load %arg5[%c40, %c0_25] : memref<72x8xbf16, #tpu.memory_space<vmem>>, vector<8x8xbf16>
    %39 = vector.extract_strided_slice %14 {offsets = [0, 640], sizes = [8, 128], strides = [1, 1]} : vector<8x1152xbf16> to vector<8x128xbf16>
    %cst_26 = arith.constant dense<0.000000e+00> : vector<8x128xf32>
    %40 = tpu.matmul %38, %39, %cst_26 {dimension_numbers = #tpu.dot_dimension_numbers<[1], [0], [0], [1], [0, 0, 1, 1], [], []>} : vector<8x8xbf16>, vector<8x128xbf16>, vector<8x128xf32> -> vector<8x128xf32>
    %41 = arith.addf %37, %40 : vector<8x128xf32>
    %c48 = arith.constant 48 : index
    %c0_27 = arith.constant 0 : index
    %42 = vector.load %arg5[%c48, %c0_27] : memref<72x8xbf16, #tpu.memory_space<vmem>>, vector<8x8xbf16>
    %43 = vector.extract_strided_slice %14 {offsets = [0, 768], sizes = [8, 128], strides = [1, 1]} : vector<8x1152xbf16> to vector<8x128xbf16>
    %cst_28 = arith.constant dense<0.000000e+00> : vector<8x128xf32>
    %44 = tpu.matmul %42, %43, %cst_28 {dimension_numbers = #tpu.dot_dimension_numbers<[1], [0], [0], [1], [0, 0, 1, 1], [], []>} : vector<8x8xbf16>, vector<8x128xbf16>, vector<8x128xf32> -> vector<8x128xf32>
    %45 = arith.addf %41, %44 : vector<8x128xf32>
    %c56 = arith.constant 56 : index
    %c0_29 = arith.constant 0 : index
    %46 = vector.load %arg5[%c56, %c0_29] : memref<72x8xbf16, #tpu.memory_space<vmem>>, vector<8x8xbf16>
    %47 = vector.extract_strided_slice %14 {offsets = [0, 896], sizes = [8, 128], strides = [1, 1]} : vector<8x1152xbf16> to vector<8x128xbf16>
    %cst_30 = arith.constant dense<0.000000e+00> : vector<8x128xf32>
    %48 = tpu.matmul %46, %47, %cst_30 {dimension_numbers = #tpu.dot_dimension_numbers<[1], [0], [0], [1], [0, 0, 1, 1], [], []>} : vector<8x8xbf16>, vector<8x128xbf16>, vector<8x128xf32> -> vector<8x128xf32>
    %49 = arith.addf %45, %48 : vector<8x128xf32>
    %c64 = arith.constant 64 : index
    %c0_31 = arith.constant 0 : index
    %50 = vector.load %arg5[%c64, %c0_31] : memref<72x8xbf16, #tpu.memory_space<vmem>>, vector<8x8xbf16>
    %51 = vector.extract_strided_slice %14 {offsets = [0, 1024], sizes = [8, 128], strides = [1, 1]} : vector<8x1152xbf16> to vector<8x128xbf16>
    %cst_32 = arith.constant dense<0.000000e+00> : vector<8x128xf32>
    %52 = tpu.matmul %50, %51, %cst_32 {dimension_numbers = #tpu.dot_dimension_numbers<[1], [0], [0], [1], [0, 0, 1, 1], [], []>} : vector<8x8xbf16>, vector<8x128xbf16>, vector<8x128xf32> -> vector<8x128xf32>
    %53 = arith.addf %49, %52 : vector<8x128xf32>
    %c0_33 = arith.constant 0 : index
    %c2 = arith.constant 2 : index
    %54 = vector.load %arg6[%c0_33, %c2] : memref<8x4xf32, #tpu.memory_space<vmem>>, vector<8x1xf32>
    %c0_34 = arith.constant 0 : index
    %c3 = arith.constant 3 : index
    %55 = vector.load %arg6[%c0_34, %c3] : memref<8x4xf32, #tpu.memory_space<vmem>>, vector<8x1xf32>
    %56 = vector.broadcast %54 : vector<8x1xf32> to vector<8x128xf32>
    %57 = arith.mulf %53, %56 : vector<8x128xf32>
    %58 = vector.broadcast %55 : vector<8x1xf32> to vector<8x128xf32>
    %59 = arith.addf %57, %58 : vector<8x128xf32>
    %cst_35 = arith.constant 0.000000e+00 : f32
    %60 = vector.broadcast %cst_35 : f32 to vector<8x128xf32>
    %61 = arith.maximumf %59, %60 : vector<8x128xf32>
    %c0_36 = arith.constant 0 : index
    %c0_37 = arith.constant 0 : index
    %62 = vector.load %arg8[%c0_36, %c0_37] : memref<8x128xf32, #tpu.memory_space<vmem>>, vector<8x128xf32>
    tpu.vector_store %arg8[%c0_36, %c0_37], %61 {strides = array<i32>} : memref<8x128xf32, #tpu.memory_space<vmem>>, vector<8x128xf32>,
    return
  }
  func.func @transform_0(%arg0: i32) -> (i32, i32) {
    %c0_i32 = arith.constant 0 : i32
    %c0_i32_0 = arith.constant 0 : i32
    %c0_i32_1 = arith.constant 0 : i32
    return %c0_i32, %c0_i32_0 : i32, i32
  }
  func.func @transform_1(%arg0: i32) -> (i32, i32) {
    %c0_i32 = arith.constant 0 : i32
    %c0_i32_0 = arith.constant 0 : i32
    %c0_i32_1 = arith.constant 0 : i32
    return %c0_i32, %c0_i32_0 : i32, i32
  }
  func.func @transform_2(%arg0: i32) -> (i32, i32) {
    %c0_i32 = arith.constant 0 : i32
    %c0_i32_0 = arith.constant 0 : i32
    %c0_i32_1 = arith.constant 0 : i32
    return %c0_i32, %c0_i32_0 : i32, i32
  }
  func.func @transform_3(%arg0: i32) -> (i32, i32) {
    %c0_i32 = arith.constant 0 : i32
    %c0_i32_0 = arith.constant 0 : i32
    %c0_i32_1 = arith.constant 0 : i32
    return %c0_i32, %c0_i32_0 : i32, i32
  }
  func.func @transform_4(%arg0: i32) -> (i32, i32) {
    %c0_i32 = arith.constant 0 : i32
    %c0_i32_0 = arith.constant 0 : i32
    %c0_i32_1 = arith.constant 0 : i32
    return %c0_i32, %c0_i32_0 : i32, i32
  }
  func.func @transform_5(%arg0: i32) -> (i32, i32) {
    %c0_i32 = arith.constant 0 : i32
    %c0_i32_0 = arith.constant 0 : i32
    %c0_i32_1 = arith.constant 0 : i32
    return %c0_i32, %c0_i32_0 : i32, i32
  }
  func.func @transform_6(%arg0: i32) -> (i32, i32) {
    %c0_i32 = arith.constant 0 : i32
    %c0_i32_0 = arith.constant 0 : i32
    %c0_i32_1 = arith.constant 0 : i32
    return %c0_i32, %c0_i32_0 : i32, i32
  }
  func.func @transform_7(%arg0: i32) -> (i32, i32) {
    %c0_i32 = arith.constant 0 : i32
    %c0_i32_0 = arith.constant 0 : i32
    %c0_i32_1 = arith.constant 0 : i32
    return %c0_i32, %c0_i32_0 : i32, i32
  }
}

</mosaic_0001>

<bundles_post_ra>
// kernel: custom-call
= control target key start
LH: loop header
LB: loop body
LE: loop exit
PB: predicated region body
PF: predicated region fallthrough
CT: control target
= control target key end

     0   :  { %s6_s0 = inlined_call_operand.vmem [shape: f32[1152], index: 0, kind: output, shape index: {}]  }

// kernel: tile.38
= control target key start
LH: loop header
LB: loop body
LE: loop exit
PB: predicated region body
PF: predicated region fallthrough
CT: control target
= control target key end

     0   :  { %s22_s0 = inlined_call_operand.vmem [shape: f32[36], index: 0, kind: input, shape index: {}]   ;;  %s23_s1 = inlined_call_operand.vmem [shape: f32[2,1,1,36], index: 1, kind: output, shape index: {}]  }
   0x1   :  { %v4_v0 = vld [vmem:[%s22_s0] ss:$0 sm:$0xff] }
   0x2   :  { %5 = vst [vmem:[%s23_s1] sm:$0x3] %v4_v0 }

// kernel: tile.39
= control target key start
LH: loop header
LB: loop body
LE: loop exit
PB: predicated region body
PF: predicated region fallthrough
CT: control target
= control target key end

     0   :  { %vm7_vm0 = vcmask 293888   ;;  %vm13_vm1 = vcmask 589088   ;;  %s39_s0 = inlined_call_operand.vmem [shape: f32[2,1,1,36], index: 0, kind: input, shape index: {}]   ;;  %s40_s1 = inlined_call_operand.vmem [shape: f32[72], index: 1, kind: output, shape index: {}]  }
   0x1   :  { %v4_v0 = vld [vmem:[%s39_s0] sm:$0x3]  ;;  %s22_s0 = smov 36  }
   0x2   :  { %5 = vst [vmem:[#allocation1] sm:$0x3] %v4_v0 }
   0x9   :  { %v10_v1 = vld [vmem:[#allocation1 + $0x1] sm:$0x1]   ;;  %v6_v2 = vld [vmem:[#allocation1] sm:$0x1]  }
   0xa   :  { %11 = vrot.lane.b32.xlu0 %v10_v1, %s22_s0  ;;  %8 = vst.msk [vmem:[#allocation0] sm:$0x1] %vm7_vm0, %v6_v2  }
  0x7c   :  { %v12_v3 = vpop.permute.xlu0 %11  }
  0x7d   :  { %14 = vst.msk [vmem:[#allocation0] sm:$0x1] %vm13_vm1, %v12_v3  }
  0x84   :  { %v18_v4 = vld [vmem:[#allocation0] sm:$0x1] }
  0x85   :  { %20 = vst [vmem:[%s40_s1] sm:$0x1] %v18_v4 }

// kernel: resnet_block_forward.1
= control target key start
LH: loop header
LB: loop body
LE: loop exit
PB: predicated region body
PF: predicated region fallthrough
CT: control target
= control target key end

     0   :  { %v1252_v1 = vmov 0   ;;  %v1253_v3 = vmov 0.0   ;;  %vm1254_vm0 = vmmov 0   ;;  %vm172_vm1 = vcmask 1043456   ;;  %s1555_s0 = inlined_call_operand.vmem [shape: bf16[40,1152], index: 0, kind: input, shape index: {}]   ;;  %s1556_s2 = inlined_call_operand.vmem [shape: bf16[8,40], index: 2, kind: input, shape index: {}]   ;;  %s1557_s5 = inlined_call_operand.vmem [shape: f32[8,4], index: 5, kind: input, shape index: {}]   ;;  %s1558_s1 = inlined_call_operand.vmem [shape: bf16[40,128], index: 1, kind: input, shape index: {}]   ;;  %s1559_s3 = inlined_call_operand.vmem [shape: bf16[8,40], index: 3, kind: input, shape index: {}]   ;;  %s1560_s6 = inlined_call_operand.vmem [shape: f32[1,1152], index: 6, kind: input, shape index: {}]   ;;  %s1561_s4 = inlined_call_operand.vmem [shape: bf16[72,8], index: 4, kind: input, shape index: {}]   ;;  %s1562_s7 = inlined_call_operand.vmem [shape: f32[8,128], index: 7, kind: output, shape index: {}]  }
   0x1   :  { %v1214_v0 = vld [vmem:[%s1555_s0 + $0x4] ss:$36 sps:$4 sm:$0xff]   ;;  %232 = vmatprep.mubr.bf16.mxu0 %v1252_v1  ;;  %1209 = vset.pattern.permute.xlu0 %v1252_v1  ;;  %v1217_v4 = vld [vmem:[%s1555_s0 + $0x4c] ss:$36 sps:$4 sm:$0xff]   ;;  %v1326_v11 = vld [vmem:[%s1556_s2] sm:$0xf]  ;;  %v445_v46 = vlaneseq }
   0x2   :  { %v1216_v2 = vld [vmem:[%s1555_s0] ss:$36 sps:$4 sm:$0xff]   ;;  %1109 = vmatprep.subr.bf16.mxu1 %v1253_v3  ;;  %1111 = vmatprep.mubr.msk.bf16.mxu1 %vm1254_vm0, %v1253_v3  ;;  %v48_v5 = vld [vmem:[%s1555_s0 + $0x90] sm:$0xff]  ;;  %v1219_v6 = vld [vmem:[%s1555_s0 + $0x48] ss:$36 sps:$4 sm:$0xff]   ;;  %vm168_vm2 = vcmask 326656  }
   0x3   :  { %200 = vmatprep.subr.bf16.mxu0 %v1214_v0  ;;  %v1042_v7 = vcombine.high %v48_v5, %v48_v5  ;;  %v1041_v8 = vcombine.low %v48_v5, %v48_v5  ;;  %v1224_v10 = vld [vmem:[%s1555_s0 + $0xc] ss:$36 sps:$4 sm:$0xff]   ;;  %v1227_v13 = vld [vmem:[%s1555_s0 + $0x54] ss:$36 sps:$4 sm:$0xff]   ;;  %v1346_v16 = vld [vmem:[%s1557_s5] sm:$0xff]  ;;  %v1255_v21 = vmov 1  }
   0x4   :  { %201 = vmatpush1.bf16.msra.mxu0 %v1216_v2  ;;  %v1222_v12 = vld [vmem:[%s1555_s0 + $0x8] ss:$36 sps:$4 sm:$0xff]   ;;  %v49_v14 = vld [vmem:[%s1555_s0 + $0x98] sm:$0xff]  ;;  %v1225_v15 = vld [vmem:[%s1555_s0 + $0x50] ss:$36 sps:$4 sm:$0xff]   ;;  %407 = vperm.xlu0 %1209, %v1346_v16   ;;  %v1430_v47 = vshrl.u32 %v445_v46, 7 }
   0x5   :  { %202 = vmatprep.subr.bf16.mxu0 %v1217_v4  ;;  %v174_v9 = vsel %vm172_vm1, %v1041_v8, 0  ;;  %v1044_v17 = vcombine.high %v49_v14, %v49_v14  ;;  %v1043_v18 = vcombine.low %v49_v14, %v49_v14  ;;  %v1232_v20 = vld [vmem:[%s1555_s0 + $0x14] ss:$36 sps:$4 sm:$0xff]   ;;  %v1235_v23 = vld [vmem:[%s1555_s0 + $0x5c] ss:$36 sps:$4 sm:$0xff]   ;;  %v51_v32 = vld [vmem:[%s1555_s0 + $0xa8] sm:$0xff] }
   0x6   :  { %v1230_v22 = vld [vmem:[%s1555_s0 + $0x10] ss:$36 sps:$4 sm:$0xff]   ;;  %v50_v24 = vld [vmem:[%s1555_s0 + $0xa0] sm:$0xff]  ;;  %v1233_v25 = vld [vmem:[%s1555_s0 + $0x58] ss:$36 sps:$4 sm:$0xff]   ;;  %v1048_v34 = vcombine.high %v51_v32, %v51_v32  ;;  %v1047_v35 = vcombine.low %v51_v32, %v51_v32  ;;  %v475_v48 = vsub.s32 7, %v1430_v47 }
   0x7   :  { %v180_v19 = vsel %vm172_vm1, %v1043_v18, 0  ;;  %v1046_v26 = vcombine.high %v50_v24, %v50_v24  ;;  %v1045_v27 = vcombine.low %v50_v24, %v50_v24  ;;  %v1240_v29 = vld [vmem:[%s1555_s0 + $0x1c] ss:$36 sps:$4 sm:$0xff]   ;;  %v1243_v31 = vld [vmem:[%s1555_s0 + $0x64] ss:$36 sps:$4 sm:$0xff]   ;;  %v1256_v51 = vmov 2  }
   0x8   :  { %203 = vmatpush1.bf16.msra.mxu0 %v1219_v6  ;;  %1210 = vset.pattern.permute.xlu0 %v1255_v21  ;;  %v1238_v30 = vld [vmem:[%s1555_s0 + $0x18] ss:$36 sps:$4 sm:$0xff]   ;;  %v1241_v33 = vld [vmem:[%s1555_s0 + $0x60] ss:$36 sps:$4 sm:$0xff]   ;;  %v192_v36 = vsel %vm172_vm1, %v1047_v35, 0  ;;  %v1250_v42 = vld [vmem:[%s1558_s1 + $0x8] sm:$0xff]  }
   0x9   :  { %1050 = vmatprep.subr.msk.bf16.mxu0 %vm172_vm1, %v1042_v7  ;;  %420 = vperm.xlu0 %1210, %v1346_v16   ;;  %v186_v28 = vsel %vm172_vm1, %v1045_v27, 0  ;;  %v1246_v37 = vld [vmem:[%s1555_s0 + $0x20] ss:$36 sps:$4 sm:$0xff]   ;;  %v1247_v38 = vld [vmem:[%s1555_s0 + $0x68] ss:$36 sps:$4 sm:$0xff]   ;;  %v1257_v52 = vmov 3  }
   0xa   :  { %v1248_v39 = vld [vmem:[%s1555_s0 + $0xb0] ss:$0 sps:$4 sm:$0xff]   ;;  %v1249_v41 = vld [vmem:[%s1558_s1] sm:$0xff]   ;;  %1211 = vset.pattern.permute.xlu1 %v1256_v51  ;;  %v447_v54 = vsub.s32 0, %v1430_v47  ;;  %v451_v57 = vsub.s32 1, %v1430_v47  ;;  %vm515_vm3 = vcmask 64512  }
   0xb   :  { %v198_v40 = vsel %vm172_vm1, %v1248_v39, 0  ;;  %v1251_v43 = vld [vmem:[%s1558_s1 + $0x10] ss:$0 sps:$4 sm:$0xff]   ;;  %v508_v45 = vld [vmem:[%s1559_s3] sm:$0xf]  ;;  %1008 = vperm.xlu1 %1211, %v1346_v16  }
   0xc   :  { %205 = vmatpush1.bf16.msra.mxu0 %v174_v9  ;;  %v581_v44 = vsel %vm172_vm1, %v1251_v43, 0  ;;  %v1436_v49 = vld [vmem:[%s1560_s6] sm:$0xff]  ;;  %v455_v9 = vsub.s32 2, %v1430_v47 }
   0xd   :  { %241 = vmatprep.subr.bf16.mxu0 %v1224_v10  ;;  %v1439_v50 = vrot.slane %v1436_v49, %v475_v48  ;;  %1213 = vset.pattern.permute.xlu0 %v1257_v52  ;;  %v448_v0 = vrot.slane %v1436_v49, %v447_v54  ;;  %v452_v2 = vrot.slane %v1436_v49, %v451_v57 }
   0xe   :  { %v456_v18 = vrot.slane %v1436_v49, %v455_v9 }
   0xf   :  { %1051 = vmatmul.mubr.msk.bf16.vlgmr.msra.gmra.mrb[0].mxu0 %vm168_vm2, %v1326_v11  ;;  %1212 = vset.pattern.permute.xlu1 %v1257_v52 }
  0x10   :  { %242 = vmatpush1.bf16.msra.mxu0 %v1222_v12  ;;  %273 = vmatprep.mubr.bf16.mxu0 %v1252_v1 }
  0x11   :  { %243 = vmatprep.subr.bf16.mxu0 %v1227_v13  ;;  %1013 = vperm.xlu1 %1212, %v1346_v16   ;;  %v514_v13 = vld [vmem:[%s1561_s4] sm:$0xf] }
  0x14   :  { %244 = vmatpush1.bf16.msra.mxu0 %v1225_v15 }
  0x15   :  { %1052 = vmatprep.subr.msk.bf16.mxu0 %vm172_vm1, %v1044_v17 }
  0x18   :  { %246 = vmatpush1.bf16.msra.mxu0 %v180_v19 }
  0x19   :  { %282 = vmatprep.subr.bf16.mxu0 %v1232_v20 }
  0x1b   :  { %1053 = vmatmul.mubr.msk.bf16.vlgmr.msra.gmra.mrb[4].mxu0 %vm168_vm2, %v1326_v11 }
  0x1c   :  { %283 = vmatpush1.bf16.msra.mxu0 %v1230_v22  ;;  %314 = vmatprep.mubr.bf16.mxu0 %v1252_v1 }
  0x1d   :  { %284 = vmatprep.subr.bf16.mxu0 %v1235_v23 }
  0x20   :  { %285 = vmatpush1.bf16.msra.mxu0 %v1233_v25  ;;  %v459_v25 = vsub.s32 3, %v1430_v47 }
  0x21   :  { %1054 = vmatprep.subr.msk.bf16.mxu0 %vm172_vm1, %v1046_v26  ;;  %v623_v26 = vld [vmem:[%s1561_s4 + $0x4] sm:$0xf] }
  0x24   :  { %287 = vmatpush1.bf16.msra.mxu0 %v186_v28 }
  0x25   :  { %323 = vmatprep.subr.bf16.mxu0 %v1240_v29  ;;  %v460_v29 = vrot.slane %v1436_v49, %v459_v25 }
  0x27   :  { %1055 = vmatmul.mubr.msk.bf16.vlgmr.msra.gmra.mrb[8].mxu0 %vm168_vm2, %v1326_v11 }
  0x28   :  { %324 = vmatpush1.bf16.msra.mxu0 %v1238_v30  ;;  %355 = vmatprep.mubr.bf16.mxu0 %v1252_v1 }
  0x29   :  { %325 = vmatprep.subr.bf16.mxu0 %v1243_v31 }
  0x2c   :  { %326 = vmatpush1.bf16.msra.mxu0 %v1241_v33 }
  0x2d   :  { %1056 = vmatprep.subr.msk.bf16.mxu0 %vm172_vm1, %v1048_v34 }
  0x30   :  { %328 = vmatpush1.bf16.msra.mxu0 %v192_v36 }
  0x31   :  { %1099 = vmatprep.subr.bf16.mxu0 %v1253_v3 }
  0x33   :  { %1057 = vmatmul.mubr.msk.bf16.vlgmr.msra.gmra.mrb[12].mxu0 %vm168_vm2, %v1326_v11 }
  0x34   :  { %1100 = vmatpush3.bf16.msra.mxu0 %v1246_v37  ;;  %1105 = vmatprep.mubr.msk.bf16.mxu0 %vm1254_vm0, %v1253_v3 }
  0x35   :  { %1101 = vmatprep.subr.bf16.mxu0 %v1253_v3 }
  0x38   :  { %1102 = vmatpush3.bf16.msra.mxu0 %v1247_v38  ;;  %v463_v38 = vsub.s32 4, %v1430_v47 }
  0x39   :  { %1103 = vmatprep.subr.bf16.mxu0 %v1253_v3 }
  0x3c   :  { %1104 = vmatpush3.bf16.msra.mxu0 %v198_v40  ;;  %v671_v40 = vld [vmem:[%s1561_s4 + $0x8] sm:$0xf] }
  0x3d   :  { %1115 = vmatprep.subr.bf16.mxu0 %v1253_v3 }
  0x3f   :  { %1106 = vmatmul.mubr.msk.bf16.vlgmr.msra.gmra.mrb[16].mxu0 %vm168_vm2, %v1326_v11 }
  0x40   :  { %1121 = vmatprep.mubr.msk.bf16.mxu0 %vm1254_vm0, %v1253_v3  ;;  %1116 = vmatpush3.bf16.msra.mxu0 %v1249_v41 }
  0x41   :  { %1117 = vmatprep.subr.bf16.mxu0 %v1253_v3 }
  0x44   :  { %1118 = vmatpush3.bf16.msra.mxu0 %v1250_v42  ;;  %v464_v42 = vrot.slane %v1436_v49, %v463_v38 }
  0x45   :  { %1119 = vmatprep.subr.bf16.mxu0 %v1253_v3 }
  0x48   :  { %1120 = vmatpush3.bf16.msra.mxu0 %v581_v44 }
  0x4b   :  { %1122 = vmatmul.mubr.msk.bf16.vlgmr.msra.gmra.mrb[20].mxu0 %vm168_vm2, %v508_v45 }
  0x83   :  { %v1443_v53 = vpop.permute.xlu0 %407 }
  0x88   :  { %v1446_v56 = vpop.permute.xlu0 %420 }
  0xe2   :  { %v234_v55 = vpop.f32.mrb[0].mxu0 }
  0xe3   :  { %v410_v58 = vmul.f32 %v1443_v53, %v234_v55  ;;  %v236_v59 = vpop.f32.mrb[1].mxu0 }
  0xe4   :  { %v411_v60 = vmul.f32 %v1443_v53, %v236_v59  ;;  %v238_v61 = vpop.f32.mrb[2].mxu0  ;;  %v467_v59 = vsub.s32 5, %v1430_v47 }
  0xe5   :  { %v239_v62 = vpop.f32.mrb[3].mxu0  ;;  %v423_v63 = vadd.f32 %v1446_v56, %v410_v58 }
  0xe6   :  { %v424_v1 = vadd.f32 %v1446_v56, %v411_v60  ;;  %v719_v62 = vld [vmem:[%s1561_s4 + $0xc] sm:$0xf] }
  0xe7   :  { %v432_v4 = vmax.f32 %v423_v63, 0.0 }
  0xe8   :  { %v433_v5 = vmax.f32 %v424_v1, 0.0 }
  0xe9   :  { %v490_v6 = vmul.f32 %v448_v0, %v432_v4  ;;  %v468_v0 = vrot.slane %v1436_v49, %v467_v59 }
  0xea   :  { %v491_v7 = vmul.f32 %v452_v2, %v433_v5 }
  0xeb   :  { %v499_v8 = vpack.c.bf16 %v490_v6, %v490_v6 }
  0xec   :  { %v500_v11 = vpack.c.bf16 %v491_v7, %v491_v7 }
  0xed   :  { %v520_v10 = vsel %vm172_vm1, %v499_v8, 0 }
  0xee   :  { %v275_v12 = vpop.f32.mrb[4].mxu0  ;;  %1110 = vmatpush3.bf16.msra.mxu1 %v520_v10  ;;  %v628_v21 = vsel %vm172_vm1, %v500_v11, 0  ;;  %v1059_v10 = vld [vmem:[%s1560_s6 + $0x8] ss:$0 sm:$0xff] }
  0xef   :  { %v412_v14 = vmul.f32 %v1443_v53, %v275_v12  ;;  %v277_v15 = vpop.f32.mrb[5].mxu0  ;;  %1125 = vmatprep.subr.bf16.mxu1 %v1253_v3 }
  0xf0   :  { %v279_v16 = vpop.f32.mrb[6].mxu0  ;;  %v413_v19 = vmul.f32 %v1443_v53, %v277_v15 }
  0xf1   :  { %v425_v17 = vadd.f32 %v1446_v56, %v412_v14  ;;  %v280_v20 = vpop.f32.mrb[7].mxu0  ;;  %1112 = vmatmul.mubr.msk.bf16.vlgmr.msra.gmra.mrb[0].mxu1 %vm515_vm3, %v514_v13  ;;  %v471_v13 = vsub.s32 6, %v1430_v47  ;;  %v767_v16 = vld [vmem:[%s1561_s4 + $0x10] sm:$0xf] }
  0xf2   :  { %1126 = vmatpush3.bf16.msra.mxu1 %v628_v21  ;;  %1127 = vmatprep.mubr.msk.bf16.mxu1 %vm1254_vm0, %v1253_v3  ;;  %v426_v24 = vadd.f32 %v1446_v56, %v413_v19  ;;  %v815_v19 = vld [vmem:[%s1561_s4 + $0x14] sm:$0xf]  ;;  %v863_v21 = vld [vmem:[%s1561_s4 + $0x18] sm:$0xf] }
  0xf3   :  { %v434_v22 = vmax.f32 %v425_v17, 0.0  ;;  %1131 = vmatprep.subr.bf16.mxu1 %v1253_v3 }
  0xf4   :  { %v435_v28 = vmax.f32 %v426_v24, 0.0  ;;  %v911_v24 = vld [vmem:[%s1561_s4 + $0x1c] sm:$0xf] }
  0xf5   :  { %v492_v23 = vmul.f32 %v456_v18, %v434_v22 }
  0xf6   :  { %v493_v34 = vmul.f32 %v460_v29, %v435_v28 }
  0xf7   :  { %v501_v27 = vpack.c.bf16 %v492_v23, %v492_v23 }
  0xf8   :  { %v502_v39 = vpack.c.bf16 %v493_v34, %v493_v34 }
  0xf9   :  { %1128 = vmatmul.mubr.msk.bf16.vlgmr.msra.gmra.mrb[4].mxu1 %vm515_vm3, %v623_v26  ;;  %v676_v30 = vsel %vm172_vm1, %v501_v27, 0 }
  0xfa   :  { %v316_v31 = vpop.f32.mrb[8].mxu0  ;;  %1132 = vmatpush3.bf16.msra.mxu1 %v676_v30  ;;  %1133 = vmatprep.mubr.msk.bf16.mxu1 %vm1254_vm0, %v1253_v3  ;;  %v724_v43 = vsel %vm172_vm1, %v502_v39, 0  ;;  %v959_v30 = vld [vmem:[%s1561_s4 + $0x20] sm:$0xf] }
  0xfb   :  { %v318_v32 = vpop.f32.mrb[9].mxu0  ;;  %1137 = vmatprep.subr.bf16.mxu1 %v1253_v3  ;;  %v414_v35 = vmul.f32 %v1443_v53, %v316_v31 }
  0xfc   :  { %v320_v33 = vpop.f32.mrb[10].mxu0  ;;  %v415_v52 = vmul.f32 %v1443_v53, %v318_v32 }
  0xfd   :  { %v321_v36 = vpop.f32.mrb[11].mxu0  ;;  %v427_v37 = vadd.f32 %v1446_v56, %v414_v35 }
  0xfe   :  { %v428_v58 = vadd.f32 %v1446_v56, %v415_v52  ;;  %v1009_v36 = vpop.permute.xlu1 %1008 }
  0xff   :  { %v436_v41 = vmax.f32 %v427_v37, 0.0 }
 0x100   :  { %v437_v63 = vmax.f32 %v428_v58, 0.0 }
 0x101   :  { %v494_v51 = vmul.f32 %v464_v42, %v436_v41 }
 0x102   :  { %v495_v6 = vmul.f32 %v468_v0, %v437_v63 }
 0x103   :  { %v503_v60 = vpack.c.bf16 %v494_v51, %v494_v51 }
 0x104   :  { %v504_v15 = vpack.c.bf16 %v495_v6, %v495_v6 }
 0x105   :  { %1134 = vmatmul.mubr.msk.bf16.vlgmr.msra.gmra.mrb[4].mxu1 %vm515_vm3, %v671_v40  ;;  %v772_v1 = vsel %vm172_vm1, %v503_v60, 0  ;;  %v1014_v40 = vpop.permute.xlu1 %1013 }
 0x106   :  { %1138 = vmatpush3.bf16.msra.mxu1 %v724_v43  ;;  %v357_v44 = vpop.f32.mrb[12].mxu0  ;;  %1139 = vmatprep.mubr.msk.bf16.mxu1 %vm1254_vm0, %v1253_v3  ;;  %v820_v18 = vsel %vm172_vm1, %v504_v15, 0 }
 0x107   :  { %v359_v45 = vpop.f32.mrb[13].mxu0  ;;  %1143 = vmatprep.subr.bf16.mxu1 %v1253_v3  ;;  %v416_v7 = vmul.f32 %v1443_v53, %v357_v44 }
 0x108   :  { %v417_v46 = vmul.f32 %v1443_v53, %v359_v45  ;;  %v361_v48 = vpop.f32.mrb[14].mxu0 }
 0x109   :  { %v362_v54 = vpop.f32.mrb[15].mxu0  ;;  %v429_v12 = vadd.f32 %v1446_v56, %v416_v7 }
 0x10a   :  { %v430_v55 = vadd.f32 %v1446_v56, %v417_v46 }
 0x10b   :  { %v438_v17 = vmax.f32 %v429_v12, 0.0 }
 0x10c   :  { %v439_v57 = vmax.f32 %v430_v55, 0.0 }
 0x10e   :  { %v497_v61 = vmul.f32 %v1439_v50, %v439_v57 }
 0x110   :  { %v506_v20 = vpack.c.bf16 %v497_v61, %v497_v61 }
 0x111   :  { %1140 = vmatmul.mubr.msk.bf16.vlgmr.msra.gmra.mrb[4].mxu1 %vm515_vm3, %v719_v62 }
 0x112   :  { %1144 = vmatpush3.bf16.msra.mxu1 %v772_v1  ;;  %v398_v2 = vpop.f32.mrb[16].mxu0  ;;  %1145 = vmatprep.mubr.msk.bf16.mxu1 %vm1254_vm0, %v1253_v3  ;;  %v916_v22 = vsel %vm172_vm1, %v506_v20, 0 }
 0x113   :  { %v418_v4 = vmul.f32 %v1443_v53, %v398_v2  ;;  %1149 = vmatprep.subr.bf16.mxu1 %v1253_v3  ;;  %v1107_v50 = vpop.f32.mrb[17].mxu0  ;;  %v472_v53 = vrot.slane %v1436_v49, %v471_v13 }
 0x114   :  { %v401_v5 = vpop.f32.mrb[18].mxu0 }
 0x115   :  { %v431_v8 = vadd.f32 %v1446_v56, %v418_v4  ;;  %v1108_v9 = vpop.f32.mrb[19].mxu0  ;;  %v496_v47 = vmul.f32 %v472_v53, %v438_v17 }
 0x117   :  { %v440_v11 = vmax.f32 %v431_v8, 0.0  ;;  %v505_v56 = vpack.c.bf16 %v496_v47, %v496_v47 }
 0x119   :  { %v498_v14 = vmul.f32 %v1059_v10, %v440_v11  ;;  %v868_v49 = vsel %vm172_vm1, %v505_v56, 0 }
 0x11b   :  { %v507_v23 = vpack.c.bf16 %v498_v14, %v498_v14 }
 0x11d   :  { %1146 = vmatmul.mubr.msk.bf16.vlgmr.msra.gmra.mrb[4].mxu1 %vm515_vm3, %v767_v16  ;;  %v964_v25 = vsel %vm172_vm1, %v507_v23, 0 }
 0x11e   :  { %1150 = vmatpush3.bf16.msra.mxu1 %v820_v18  ;;  %1151 = vmatprep.mubr.msk.bf16.mxu1 %vm1254_vm0, %v1253_v3  ;;  %v617_v26 = vpop.f32.mrb[20].mxu0 }
 0x11f   :  { %1155 = vmatprep.subr.bf16.mxu1 %v1253_v3  ;;  %v1123_v27 = vpop.f32.mrb[21].mxu0 }
 0x120   :  { %v620_v28 = vpop.f32.mrb[22].mxu0 }
 0x121   :  { %v1124_v29 = vpop.f32.mrb[23].mxu0 }
 0x129   :  { %1152 = vmatmul.mubr.msk.bf16.vlgmr.msra.gmra.mrb[4].mxu1 %vm515_vm3, %v815_v19 }
 0x12a   :  { %1156 = vmatpush3.bf16.msra.mxu1 %v868_v49  ;;  %1157 = vmatprep.mubr.msk.bf16.mxu1 %vm1254_vm0, %v1253_v3 }
 0x12b   :  { %1161 = vmatprep.subr.bf16.mxu1 %v1253_v3 }
 0x135   :  { %1158 = vmatmul.mubr.msk.bf16.vlgmr.msra.gmra.mrb[4].mxu1 %vm515_vm3, %v863_v21 }
 0x136   :  { %1162 = vmatpush3.bf16.msra.mxu1 %v916_v22  ;;  %1163 = vmatprep.mubr.msk.bf16.mxu1 %vm1254_vm0, %v1253_v3 }
 0x137   :  { %1167 = vmatprep.subr.bf16.mxu1 %v1253_v3 }
 0x141   :  { %1164 = vmatmul.mubr.msk.bf16.vlgmr.msra.gmra.mrb[4].mxu1 %vm515_vm3, %v911_v24 }
 0x142   :  { %1168 = vmatpush3.bf16.msra.mxu1 %v964_v25  ;;  %1169 = vmatprep.mubr.msk.bf16.mxu1 %vm1254_vm0, %v1253_v3 }
 0x14d   :  { %1170 = vmatmul.mubr.msk.bf16.vlgmr.msra.gmra.mrb[4].mxu1 %vm515_vm3, %v959_v30 }
 0x1c4   :  { %v556_v31 = vpop.f32.mrb[0].mxu1 }
 0x1c5   :  { %v1113_v32 = vpop.f32.mrb[1].mxu1  ;;  %v618_v33 = vadd.f32 %v617_v26, %v556_v31 }
 0x1c6   :  { %v559_v34 = vpop.f32.mrb[2].mxu1 }
 0x1c7   :  { %v1114_v35 = vpop.f32.mrb[3].mxu1 }
 0x220   :  { %v1000_v37 = vpop.f32.mrb[4].mxu1 }
 0x221   :  { %v1174_v38 = vadd.f32 %v1000_v37, %v618_v33  ;;  %v1171_v39 = vpop.f32.mrb[5].mxu1 }
 0x222   :  { %v1003_v3 = vpop.f32.mrb[6].mxu1 }
 0x223   :  { %v1172_v41 = vpop.f32.mrb[7].mxu1  ;;  %v1011_v42 = vmul.f32 %v1174_v38, %v1009_v36 }
 0x225   :  { %v1016_v43 = vadd.f32 %v1014_v40, %v1011_v42 }
 0x227   :  { %v1017_v44 = vmax.f32 %v1016_v43, 0.0 }
 0x229   :  { %1018 = vst [vmem:[%s1562_s7] sm:$0xff] %v1017_v44 }

</bundles_post_ra>
